<compile_context>
chip_gen: v5e
topology: v5e:2x2
jax: 0.10.0
libtpu: 0.0.40
codegen_flags: <defaults>
</compile_context>

<pallas_src>
import functools
import math

import jax
import jax.numpy as jnp
from jax.experimental import pallas as pl
from jax.experimental.pallas import tpu as pltpu


def _round_up(x, m):
    return ((x + m - 1) // m) * m


def _vmem_capacity_bytes():
    """Trace-time query of per-core VMEM; conservative 64 MiB (v7x) fallback."""
    try:
        info = pltpu.get_tpu_info()
        cap = getattr(info, "vmem_capacity_bytes", None)
        if cap:
            return int(cap)
    except Exception:
        pass
    return 64 * 1024 * 1024


# ----------------------------------------------------------------------------
# Pallas kernel: y = gelu_new(x @ Wa_t + b_a) @ Wb_t + b_b  [+ x]
#   x:(tm,H)  wa_t:(H,r)  ba:(1,r) f32  wb_t:(r,H)  bb:(1,H) f32
# ----------------------------------------------------------------------------
def _adapter_kernel(x_ref, wa_ref, ba_ref, wb_ref, bb_ref, o_ref, *, add_residual):
    x = x_ref[...]                                           # native dtype (bf16/f32)

    # down projection: MXU accumulates in f32 regardless of streaming dtype
    h = jnp.dot(x, wa_ref[...], preferred_element_type=jnp.float32)
    h = h + ba_ref[...]                                      # (tm, r) tiny; bias is f32

    # gelu_new (HF tanh approximation) in f32 on the tiny (tm, r) tile;
    # tanh goes to the EUP, free filler under the HBM stream.
    c = math.sqrt(2.0 / math.pi)
    g = 0.5 * h * (1.0 + jnp.tanh(c * (h + 0.044715 * (h * h * h))))

    # up projection: feed the MXU in the streaming dtype (keeps bf16 bf16).
    # TODO(synk): on v7x, verify via bundle dump whether the MXU push stream
    # approaches the (3.2 TB/s) DMA stream; if so, replace this dot with r=8
    # broadcast rank-1 AXPYs on the (otherwise idle) VPU.
    y = jnp.dot(g.astype(x_ref.dtype), wb_ref[...],
                preferred_element_type=jnp.float32)
    y = y + bb_ref[...]                                      # bias is f32
    if add_residual:
        y = y + x.astype(jnp.float32)                        # x tile already in VMEM
    o_ref[...] = y.astype(o_ref.dtype)


def adapter_pallas(x2d, w_a, b_a, w_b, b_b, *, tm=None, add_residual=False):
    """x2d: (M, H); w_a: (r, H); b_a: (r,); w_b: (H, r); b_b: (H,)."""
    M, H = x2d.shape
    r = w_a.shape[0]
    dtype = x2d.dtype
    itemsize = jnp.dtype(dtype).itemsize

    # Pre-transpose the (tiny) weights once in plain JAX and cast them to the
    # activation dtype; keep the (tiny) biases in f32 so the kernel adds them to
    # the f32 accumulator with no per-step cast.  No padding of x/y: the block
    # last dim equals the full array dim, which is always legal; a non-128 H
    # only means masked stores (cheaper than extra HBM pad/slice passes).
    wa_t = jnp.transpose(w_a).astype(dtype)                       # (H, r)
    wb_t = jnp.transpose(w_b).astype(dtype)                       # (r, H)
    ba2 = b_a.astype(jnp.float32).reshape(1, r)
    bb2 = b_b.astype(jnp.float32).reshape(1, H)

    # ---- generation-aware streaming budget ----------------------------------
    vmem_cap = _vmem_capacity_bytes()
    if vmem_cap >= 96 * 1024 * 1024:       # v5e / v6e: 128 MiB physical VMEM
        budget = 40 * 1024 * 1024          # bytes for the 2x double-buffered x/y tiles
    else:                                  # v7x: 64 MiB per TensorCore
        budget = 20 * 1024 * 1024

    # ---- row-tile selection --------------------------------------------------
    pack = 8 * max(1, 4 // itemsize)       # 8 rows (f32) / 16 rows (bf16) sublane pack
    if tm is None:
        # As large as the budget allows (2 streams x double buffer = 4 tiles)...
        tm = budget // (4 * H * itemsize)
        # ...but keep >=4 grid programs when possible (feeds both v7x TCs and
        # gives the pipeline something to overlap), never shrinking a tile
        # below ~1 MiB to do so.
        min_tile_rows = max(pack, (1 << 20) // (H * itemsize))
        tm = min(tm, max(pl.cdiv(M, 4), min_tile_rows))
        tm = max(pack, (tm // pack) * pack)
    tm = min(tm, _round_up(M, pack))       # don't over-tile tiny problems
    tm = max(pack, (tm // pack) * pack)

    grid = (pl.cdiv(M, tm),)

    cost = pl.CostEstimate(
        flops=int(4 * M * H * r),
        transcendentals=int(M * r),
        bytes_accessed=int(2 * M * H * itemsize
                           + 2 * H * r * itemsize + (H + r) * 4),
    )

    # scoped VMEM: double-buffered x/y tiles + double-buffered tiny weights/biases;
    # track the real requirement (plus headroom) instead of a fixed clamp.
    vmem_needed = 4 * tm * H * itemsize + 4 * (2 * H * r * itemsize + (H + r) * 4)
    vmem_limit = int(min(max(vmem_needed + (2 << 20), 8 << 20),
                         (vmem_cap * 9) // 10))

    kernel = functools.partial(_adapter_kernel, add_residual=add_residual)

    y = pl.pallas_call(
        kernel,
        out_shape=jax.ShapeDtypeStruct((M, H), dtype),
        grid_spec=pltpu.PrefetchScalarGridSpec(
            num_scalar_prefetch=0,
            grid=grid,
            in_specs=[
                # streamed activations, tiled over rows (double-buffered)
                pl.BlockSpec((tm, H), lambda i: (i, 0)),
                # constant-index weight/bias operands: Pallas skips the re-DMA
                # when the block index is unchanged, so these stay resident.
                # TODO(synk): mark pipeline_mode=pl.Buffered(1) once verified
                # on the deployed JAX version (negligible VMEM at r=8 anyway).
                pl.BlockSpec((H, r), lambda i: (0, 0)),
                pl.BlockSpec((1, r), lambda i: (0, 0)),
                pl.BlockSpec((r, H), lambda i: (0, 0)),
                pl.BlockSpec((1, H), lambda i: (0, 0)),
            ],
            out_specs=pl.BlockSpec((tm, H), lambda i: (i, 0)),
        ),
        compiler_params=pltpu.CompilerParams(
            dimension_semantics=("parallel",),      # shards grid across v7x TCs
            vmem_limit_bytes=vmem_limit,
        ),
        cost_estimate=cost,
    )(x2d, wa_t, ba2, wb_t, bb2)
    return y


# ----------------------------------------------------------------------------
# Plain-JAX glue reproducing SAdapterLayer.sample_adapter / sample_weights
# (architecture-search weight mixing; tiny parameter math, not the hot path).
# ----------------------------------------------------------------------------
def sample_adapter(w_a, w_b, b_a, gumbel_weights, candidate_dims,
                   dimension_mask=None, iterative_order=None, main_forward=None):
    bottleneck_dim = max(candidate_dims)
    if iterative_order is not None and (iterative_order or main_forward):
        d1 = bottleneck_dim if dimension_mask is None else candidate_dims[dimension_mask]
        search_dims = [0, d1]
    else:
        search_dims = list(candidate_dims)

    r, _H = w_a.shape
    row_idx = jnp.arange(r)
    wa_s = jnp.zeros_like(w_a)
    wb_s = jnp.zeros_like(w_b)
    ba_s = jnp.zeros_like(b_a)
    for k, d in enumerate(search_dims):
        g = gumbel_weights[k]
        mask = (row_idx < d).astype(w_a.dtype)          # mask over bottleneck rows/cols
        wa_s = wa_s + g * (mask[:, None] * w_a)
        wb_s = wb_s + jax.lax.stop_gradient(g) * (mask[None, :] * w_b)  # .detach() in torch
        ba_s = ba_s + g * (mask * b_a)
    return wa_s, wb_s, ba_s


def s_adapter_forward(hiddens, params, gumbel_weights=None, dimension_mask=None,
                      iterative_order=None, main_forward=None,
                      candidate_dims=(1, 4, 8), add_residual=False):
    """Mirrors SAdapterLayer.forward for the search path (gumbel_weights given)
    and the default path (gumbel_weights None, no fix_weight).  add_residual
    fuses `hiddens + adapter(hiddens)` into the kernel for call sites that want
    the standard adapter residual (off by default to match module semantics)."""
    w_a, b_a, w_b, b_b = params["w_a"], params["b_a"], params["w_b"], params["b_b"]
    if gumbel_weights is not None:
        w_a, w_b, b_a = sample_adapter(
            w_a, w_b, b_a, gumbel_weights, list(candidate_dims),
            dimension_mask=dimension_mask, iterative_order=iterative_order,
            main_forward=main_forward)
    # TODO(synk): fix_weight / retrain_flag branches (nn.Parameter re-binding,
    # weight slicing to dim_choice, `return 0` when the adapter is pruned) are
    # parameter-management glue; they reuse this same kernel with sliced params.
    B, S, H = hiddens.shape
    x2d = hiddens.reshape(B * S, H)
    y2d = adapter_pallas(x2d, w_a, b_a, w_b, b_b, add_residual=add_residual)
    return y2d.reshape(B, S, H)


# ----------------------------------------------------------------------------
def _gelu_new_ref(x):
    c = math.sqrt(2.0 / math.pi)
    return 0.5 * x * (1.0 + jnp.tanh(c * (x + 0.044715 * x ** 3)))


if __name__ == "__main__":
    # Small shapes consistent with the module: hidden_dim=32, bottleneck=8.
    B, S, H = 2, 8, 32
    R = 8                                   # max(candidate_dims)
    key = jax.random.PRNGKey(0)
    k1, k2, k3, k4 = jax.random.split(key, 4)

    # _init_weight: normal(mean=0, std=0.01) for Linear weights, zero biases.
    params = {
        "w_a": 0.01 * jax.random.normal(k1, (R, H), jnp.float32),   # down_proj.weight
        "b_a": jnp.zeros((R,), jnp.float32),                        # down_proj.bias
        "w_b": 0.01 * jax.random.normal(k2, (H, R), jnp.float32),   # up_proj.weight
        "b_b": jnp.zeros((H,), jnp.float32),                        # up_proj.bias
    }
    hiddens = jax.random.normal(k3, (B, S, H), jnp.float32)

    # ---- default path (no gumbel_weights, no fix_weight) ----
    out = s_adapter_forward(hiddens, params)
    out = jax.block_until_ready(out)

    # pure-JAX reference
    ref = _gelu_new_ref(hiddens @ params["w_a"].T + params["b_a"]) @ params["w_b"].T + params["b_b"]
    assert out.shape == (B, S, H)
    assert jnp.allclose(out, ref, atol=1e-5, rtol=1e-5)

    # ---- architecture-search path (gumbel_weights over candidate dims) ----
    gumbel = jax.nn.softmax(jax.random.normal(k4, (3,), jnp.float32))
    out_g = jax.block_until_ready(
        s_adapter_forward(hiddens, params, gumbel_weights=gumbel))
    wa_s, wb_s, ba_s = sample_adapter(params["w_a"], params["w_b"], params["b_a"],
                                      gumbel, [1, 4, 8])
    ref_g = _gelu_new_ref(hiddens @ wa_s.T + ba_s) @ wb_s.T + params["b_b"]
    assert jnp.allclose(out_g, ref_g, atol=1e-5, rtol=1e-5)

    # ---- fused-residual variant (for `hidden + adapter(hidden)` call sites) ----
    out_res = jax.block_until_ready(
        s_adapter_forward(hiddens, params, add_residual=True))
    assert jnp.allclose(out_res, ref + hiddens, atol=1e-5, rtol=1e-5)

    print("KERNEL_OK")
</pallas_src>

<mosaic_0001>
module attributes {stable_mosaic.version = 11 : i64} {
  func.func @_adapter_kernel(%arg0: i32, %arg1: memref<16x32xf32, #tpu.memory_space<vmem>>, %arg2: memref<32x8xf32, #tpu.memory_space<vmem>>, %arg3: memref<1x8xf32, #tpu.memory_space<vmem>>, %arg4: memref<8x32xf32, #tpu.memory_space<vmem>>, %arg5: memref<1x32xf32, #tpu.memory_space<vmem>>, %arg6: memref<16x32xf32, #tpu.memory_space<vmem>>) attributes {dimension_semantics = [#tpu.dimension_semantics<parallel>], iteration_bounds = array<i64: 1>, scalar_prefetch = 0 : i64, scratch_operands = 0 : i64, tpu.core_type = #tpu.core_type<tc>, window_params = [{transform_indices = @transform_0, window_bounds = array<i64: 16, 32>}, {pipeline_mode = #tpu.pipeline_mode<synchronous>, transform_indices = @transform_1, window_bounds = array<i64: 32, 8>}, {pipeline_mode = #tpu.pipeline_mode<synchronous>, transform_indices = @transform_2, window_bounds = array<i64: 1, 8>}, {pipeline_mode = #tpu.pipeline_mode<synchronous>, transform_indices = @transform_3, window_bounds = array<i64: 8, 32>}, {pipeline_mode = #tpu.pipeline_mode<synchronous>, transform_indices = @transform_4, window_bounds = array<i64: 1, 32>}, {transform_indices = @transform_5, window_bounds = array<i64: 16, 32>}]} {
    %c0 = arith.constant 0 : index
    %c0_0 = arith.constant 0 : index
    %0 = vector.load %arg1[%c0, %c0_0] : memref<16x32xf32, #tpu.memory_space<vmem>>, vector<16x32xf32>
    %c0_1 = arith.constant 0 : index
    %c0_2 = arith.constant 0 : index
    %1 = vector.load %arg2[%c0_1, %c0_2] : memref<32x8xf32, #tpu.memory_space<vmem>>, vector<32x8xf32>
    %cst = arith.constant dense<0.000000e+00> : vector<16x8xf32>
    %2 = tpu.matmul %0, %1, %cst {dimension_numbers = #tpu.dot_dimension_numbers<[1], [0], [0], [1], [0, 0, 1, 1], [], []>} : vector<16x32xf32>, vector<32x8xf32>, vector<16x8xf32> -> vector<16x8xf32>
    %c0_3 = arith.constant 0 : index
    %c0_4 = arith.constant 0 : index
    %3 = vector.load %arg3[%c0_3, %c0_4] : memref<1x8xf32, #tpu.memory_space<vmem>>, vector<1x8xf32>
    %4 = vector.broadcast %3 : vector<1x8xf32> to vector<16x8xf32>
    %5 = arith.addf %2, %4 : vector<16x8xf32>
    %cst_5 = arith.constant 5.000000e-01 : f32
    %6 = vector.broadcast %cst_5 : f32 to vector<16x8xf32>
    %7 = arith.mulf %6, %5 : vector<16x8xf32>
    %8 = arith.mulf %5, %5 : vector<16x8xf32>
    %9 = arith.mulf %8, %5 : vector<16x8xf32>
    %cst_6 = arith.constant 4.471500e-02 : f32
    %10 = vector.broadcast %cst_6 : f32 to vector<16x8xf32>
    %11 = arith.mulf %10, %9 : vector<16x8xf32>
    %12 = arith.addf %5, %11 : vector<16x8xf32>
    %cst_7 = arith.constant 0.797884583 : f32
    %13 = vector.broadcast %cst_7 : f32 to vector<16x8xf32>
    %14 = arith.mulf %13, %12 : vector<16x8xf32>
    %15 = math.tanh %14 : vector<16x8xf32>
    %cst_8 = arith.constant 1.000000e+00 : f32
    %16 = vector.broadcast %cst_8 : f32 to vector<16x8xf32>
    %17 = arith.addf %16, %15 : vector<16x8xf32>
    %18 = arith.mulf %7, %17 : vector<16x8xf32>
    %c0_9 = arith.constant 0 : index
    %c0_10 = arith.constant 0 : index
    %19 = vector.load %arg4[%c0_9, %c0_10] : memref<8x32xf32, #tpu.memory_space<vmem>>, vector<8x32xf32>
    %cst_11 = arith.constant dense<0.000000e+00> : vector<16x32xf32>
    %20 = tpu.matmul %18, %19, %cst_11 {dimension_numbers = #tpu.dot_dimension_numbers<[1], [0], [0], [1], [0, 0, 1, 1], [], []>} : vector<16x8xf32>, vector<8x32xf32>, vector<16x32xf32> -> vector<16x32xf32>
    %c0_12 = arith.constant 0 : index
    %c0_13 = arith.constant 0 : index
    %21 = vector.load %arg5[%c0_12, %c0_13] : memref<1x32xf32, #tpu.memory_space<vmem>>, vector<1x32xf32>
    %22 = vector.broadcast %21 : vector<1x32xf32> to vector<16x32xf32>
    %23 = arith.addf %20, %22 : vector<16x32xf32>
    %c0_14 = arith.constant 0 : index
    %c0_15 = arith.constant 0 : index
    %24 = vector.load %arg6[%c0_14, %c0_15] : memref<16x32xf32, #tpu.memory_space<vmem>>, vector<16x32xf32>
    tpu.vector_store %arg6[%c0_14, %c0_15], %23 {strides = array<i32>} : memref<16x32xf32, #tpu.memory_space<vmem>>, vector<16x32xf32>,
    return
  }
  func.func @transform_0(%arg0: i32) -> (i32, i32) {
    %c0_i32 = arith.constant 0 : i32
    %c0_i32_0 = arith.constant 0 : i32
    return %arg0, %c0_i32 : i32, i32
  }
  func.func @transform_1(%arg0: i32) -> (i32, i32) {
    %c0_i32 = arith.constant 0 : i32
    %c0_i32_0 = arith.constant 0 : i32
    %c0_i32_1 = arith.constant 0 : i32
    return %c0_i32, %c0_i32_0 : i32, i32
  }
  func.func @transform_2(%arg0: i32) -> (i32, i32) {
    %c0_i32 = arith.constant 0 : i32
    %c0_i32_0 = arith.constant 0 : i32
    %c0_i32_1 = arith.constant 0 : i32
    return %c0_i32, %c0_i32_0 : i32, i32
  }
  func.func @transform_3(%arg0: i32) -> (i32, i32) {
    %c0_i32 = arith.constant 0 : i32
    %c0_i32_0 = arith.constant 0 : i32
    %c0_i32_1 = arith.constant 0 : i32
    return %c0_i32, %c0_i32_0 : i32, i32
  }
  func.func @transform_4(%arg0: i32) -> (i32, i32) {
    %c0_i32 = arith.constant 0 : i32
    %c0_i32_0 = arith.constant 0 : i32
    %c0_i32_1 = arith.constant 0 : i32
    return %c0_i32, %c0_i32_0 : i32, i32
  }
  func.func @transform_5(%arg0: i32) -> (i32, i32) {
    %c0_i32 = arith.constant 0 : i32
    %c0_i32_0 = arith.constant 0 : i32
    return %arg0, %c0_i32 : i32, i32
  }
}

</mosaic_0001>

<bundles_post_ra>
// kernel: tpu_custom_call.1
= control target key start
LH: loop header
LB: loop body
LE: loop exit
PB: predicated region body
PF: predicated region fallthrough
CT: control target
= control target key end

     0   :  { %s245_s0 = inlined_call_operand.vmem [shape: f32[16,32], index: 0, kind: input, shape index: {}]   ;;  %s246_s1 = inlined_call_operand.vmem [shape: f32[32,8], index: 1, kind: input, shape index: {}]   ;;  %s247_s2 = inlined_call_operand.vmem [shape: f32[1,8], index: 2, kind: input, shape index: {}]   ;;  %s248_s3 = inlined_call_operand.vmem [shape: f32[8,32], index: 3, kind: input, shape index: {}]   ;;  %s249_s4 = inlined_call_operand.vmem [shape: f32[1,32], index: 4, kind: input, shape index: {}]   ;;  %s250_s5 = inlined_call_operand.hbm [shape: f32[16,32], index: 5, kind: output, shape index: {}]  }
   0x1   :  { %v26_v0 = vld [vmem:[%s246_s1 + $0x18] sm:$0xff]  ;;  %v25_v1 = vld [vmem:[%s246_s1 + $0x10] sm:$0xff]  ;;  %v24_v2 = vld [vmem:[%s246_s1 + $0x8] sm:$0xff] }
   0x2   :  { %50 = vmatpush.msra.mxu0 %v26_v0  ;;  %138 = vmatpush.msra.mxu2 %v26_v0 }
   0x4   :  { %51 = vmatpush.msra.mxu0 %v25_v1  ;;  %139 = vmatpush.msra.mxu2 %v25_v1 }
   0x5   :  { %10 = vsyncpa [#allocation3], 0  ;;  %v23_v3 = vld [vmem:[%s246_s1] sm:$0xff]  ;;  %vm31_vm0 = vcmask 261120   ;;  %v22_v5 = vld [vmem:[%s245_s0 + $0x8] sm:$0xff]  ;;  %vm84_vm1 = vcmask 64512  }
   0x6   :  { %52 = vmatpush.msra.mxu0 %v24_v2  ;;  %140 = vmatpush.msra.mxu2 %v24_v2  ;;  %v21_v4 = vld [vmem:[%s245_s0] sm:$0xff]  ;;  %s122_s11 = sshll.u32 %s250_s5, 4  ;;  %s179_s12 = smov 128   ;;  %s123_s11 = int_to_ptr.hbm [resolvable:$true] %s122_s11 }
   0x7   :  { %v79_v6 = vld [vmem:[%s248_s3] sm:$0xff]  ;;  %s178_s3 = smov [#allocation2]   ;;  %s180_s13 = smov 8  }
   0x8   :  { %53 = vmatpush.msra.mxu0 %v23_v3  ;;  %141 = vmatpush.msra.mxu2 %v23_v3  ;;  %v146_v7 = vld [vmem:[%s247_s2] ss:$0 sm:$0xff]  ;;  %s120_s8 = sshll.u32 %s178_s3, 4  ;;  %s121_s8 = int_to_ptr.vmem [resolvable:$true] %s120_s8 }
   0x9   :  { %134 = vmatmul.msk.f32.vlgmr.msra.gmra.mxu0 %vm31_vm0, %v21_v4  ;;  %135 = vmatmul.msk.f32.vlgmr.msra.gmra.mxu2 %vm31_vm0, %v22_v5  ;;  %v147_v30 = vld [vmem:[%s249_s4] ss:$0 sm:$0xff] }
   0xa   :  { %106 = vmatpush.msra.mxu1 %v79_v6  ;;  %142 = vmatpush.msra.mxu3 %v79_v6 }
  0x86   :  { %v55_v8 = vpop.f32.mrf.mxu0 }
  0x87   :  { %v56_v9 = vadd.f32 %v146_v7, %v55_v8 }
  0x89   :  { %v63_v10 = vmul.f32 %v56_v9, %v56_v9  ;;  %v61_v23 = vmul.f32 0.5, %v56_v9 }
  0x8b   :  { %v65_v11 = vmul.f32 %v63_v10, %v56_v9 }
  0x8c   :  { %v58_v12 = vpop.f32.mrf.mxu2 }
  0x8d   :  { %v67_v13 = vmul.f32 0.044715, %v65_v11  ;;  %v59_v14 = vadd.f32 %v146_v7, %v58_v12 }
  0x8f   :  { %v69_v15 = vadd.f32 %v67_v13, %v56_v9  ;;  %v64_v16 = vmul.f32 %v59_v14, %v59_v14  ;;  %v62_v27 = vmul.f32 0.5, %v59_v14 }
  0x91   :  { %v66_v17 = vmul.f32 %v64_v16, %v59_v14  ;;  %v71_v18 = vmul.f32 0.7978846, %v69_v15 }
  0x93   :  { %v68_v19 = vmul.f32 0.044715, %v66_v17  ;;  %148 = vtanh.f32 %v71_v18 }
  0x95   :  { %v70_v20 = vadd.f32 %v68_v19, %v59_v14 }
  0x97   :  { %v72_v21 = vmul.f32 0.7978846, %v70_v20 }
  0x99   :  { %v149_v22 = vpop.eup %148  ;;  %150 = vtanh.f32 %v72_v21 }
  0x9a   :  { %v75_v24 = vadd.f32 1.0, %v149_v22 }
  0x9c   :  { %v77_v25 = vmul.f32 %v75_v24, %v61_v23 }
  0x9e   :  { %136 = vmatmul.msk.f32.vlgmr.msra.gmra.mxu1 %vm84_vm1, %v77_v25 }
  0x9f   :  { %v151_v26 = vpop.eup %150 }
  0xa0   :  { %v76_v28 = vadd.f32 1.0, %v151_v26 }
  0xa2   :  { %v78_v29 = vmul.f32 %v76_v28, %v62_v27 }
  0xa4   :  { %137 = vmatmul.msk.f32.vlgmr.msra.gmra.mxu3 %vm84_vm1, %v78_v29 }
 0x11b   :  { %v108_v31 = vpop.f32.mrf.mxu1 }
 0x11c   :  { %v109_v32 = vadd.f32 %v147_v30, %v108_v31 }
 0x11e   :  { %114 = vst.msk [vmem:[#allocation2] sm:$0xff] %vm31_vm0, %v109_v32 }
 0x127   :  { %v111_v33 = vpop.f32.mrf.mxu3 }
 0x128   :  { %v112_v34 = vadd.f32 %v147_v30, %v111_v33 }
 0x12a   :  { %115 = vst.msk [vmem:[#allocation2 + $0x8] sm:$0xff] %vm31_vm0, %v112_v34 }
 0x12b   :  { %128 = dma.vmem_to_hbm [thread:$0]  %s121_s8, 256, %s123_s11, [#allocation3], %s179_s12, %s179_s12, %s180_s13  }
 0x12c   :  { %176 = dma.done.wait [#allocation3], 256  }
 0x12d   :  { %177 = vsyncadd [#allocation3], 4294967040 }
 0x12e   :  { %133 = vsyncpa [#allocation3], 1 }

</bundles_post_ra>
